<compile_context>
chip_gen: v5e
topology: v5e:2x2
jax: 0.10.0
libtpu: 0.0.40
codegen_flags: <defaults>
</compile_context>

<pallas_src>
import functools

import jax
import jax.numpy as jnp
from jax.experimental import pallas as pl
from jax.experimental.pallas import tpu as pltpu


def _round_up(n: int, m: int) -> int:
    return ((n + m - 1) // m) * m


def _lie_se2_kernel(uv_ref, out_ref, *, eps: float):
    """uv_ref: (3, R, 128) planes = [x; y; yaw].  out_ref: (9, R, 128) row-major T."""
    x = uv_ref[0]                          # (R, 128) -- full (8,128) vregs
    y = uv_ref[1]
    w = uv_ref[2]                          # omega_z (yaw)

    theta_sqr = w * w
    theta = jnp.abs(w)                     # == sqrt(w^2)

    # The kernel is HBM-bound after the dense layout, so exact divides are free
    # (no approx reciprocal needed) and keep the result bit-close to the reference.
    sin_t = jnp.sin(theta)
    cos_t = jnp.cos(theta)
    inv_t = 1.0 / (theta + eps)
    inv_t2 = 1.0 / (theta_sqr + eps)

    a = sin_t * inv_t                      # sin(theta)/(theta+eps)
    b = (1.0 - cos_t) * inv_t2             # (1-cos(theta))/(theta^2+eps)
    c = (1.0 - a) * inv_t2                 # (1-a)/(theta^2+eps)

    # R = I + a*skew + b*skew^2   with skew^2 = -theta^2 * I   (pure VPU math).
    r_diag = 1.0 - b * theta_sqr
    # V = I + b*skew + c*skew^2 ;  t = V @ [x, y]
    v_diag = 1.0 - c * theta_sqr
    tx = v_diag * x + (-b * w) * y
    ty = (b * w) * x + v_diag * y

    out_ref[0] = r_diag                    # T[0,0]
    out_ref[1] = -a * w                    # T[0,1]
    out_ref[2] = tx                        # T[0,2]
    out_ref[3] = a * w                     # T[1,0]
    out_ref[4] = r_diag                    # T[1,1]
    out_ref[5] = ty                        # T[1,2]
    out_ref[6] = jnp.zeros_like(x)         # T[2,0]
    out_ref[7] = jnp.zeros_like(x)         # T[2,1]
    out_ref[8] = jnp.ones_like(x)          # T[2,2]


def lie_se2_pallas(uv, eps: float = 1e-5, block_b: int = 65536):
    """uv: (B, 3) float32 -> (B, 3, 3) float32 SE(2) transforms."""
    uv = jnp.asarray(uv, jnp.float32)
    batch = uv.shape[0]

    # Batch block must be a multiple of 1024 so the sublane axis (blk//128) is a
    # multiple of 8.  Default 65536 amortizes the ~0.35us/step overhead while the
    # double-buffered VMEM footprint (48 B/sample * 2) stays ~6 MiB -- well under
    # even v5e's 16 MiB scoped-VMEM default.
    b_ceil = _round_up(batch, 1024)
    blk = min(_round_up(int(block_b), 1024), b_ceil)
    # For large batches keep ~8 grid steps so v7x's two TensorCores both get work
    # when the "parallel" batch axis is sharded across cores.
    eighth = _round_up((b_ceil + 7) // 8, 1024)
    if eighth >= 8192:
        blk = min(blk, eighth)
    b_pad = _round_up(batch, blk)

    # TODO(synk): if the producer can emit uv already as (3, B) (transforms-last),
    # this wrapper transpose (~24 B/sample of extra HBM traffic) disappears.
    uv_t = jnp.transpose(uv)               # (3, B): batch on the fast axis
    if b_pad != batch:
        uv_t = jnp.pad(uv_t, ((0, 0), (0, b_pad - batch)))  # padded tail -> identity T
    uv3 = uv_t.reshape(3, b_pad // 128, 128)  # free row-major reshape

    rows = blk // 128
    flat = pl.pallas_call(
        functools.partial(_lie_se2_kernel, eps=float(eps)),
        out_shape=jax.ShapeDtypeStruct((9, b_pad // 128, 128), jnp.float32),
        grid=(b_pad // blk,),
        in_specs=[pl.BlockSpec((3, rows, 128), lambda i: (0, i, 0))],
        out_specs=pl.BlockSpec((9, rows, 128), lambda i: (0, i, 0)),
        compiler_params=pltpu.CompilerParams(
            dimension_semantics=("parallel",),   # batch axis shardable across TCs
        ),
    )(uv3)

    # Slice the padded tail away BEFORE transposing so the wrapper-side layout
    # change only touches real samples.
    out = flat.reshape(9, b_pad)[:, :batch]
    # TODO(synk): consumers that can take a transforms-last (3, 3, B) layout should
    # use `out.reshape(3, 3, batch)` directly and skip this transpose entirely.
    return jnp.transpose(out).reshape(batch, 3, 3)


def lie_se2_reference(uv, eps: float = 1e-5):
    """Pure-JAX reference with the intended per-sample semantics."""
    uv = jnp.asarray(uv, jnp.float32)
    x, y, w = uv[:, 0], uv[:, 1], uv[:, 2]
    theta_sqr = w * w
    theta = jnp.sqrt(theta_sqr)
    a = jnp.sin(theta) / (theta + eps)
    b = (1.0 - jnp.cos(theta)) / (theta_sqr + eps)
    c = (1.0 - a) / (theta_sqr + eps)
    r_diag = 1.0 - b * theta_sqr
    v_diag = 1.0 - c * theta_sqr
    tx = v_diag * x + (-b * w) * y
    ty = (b * w) * x + v_diag * y
    zeros = jnp.zeros_like(x)
    ones = jnp.ones_like(x)
    rows = jnp.stack(
        [r_diag, -a * w, tx,
         a * w, r_diag, ty,
         zeros, zeros, ones], axis=-1)
    return rows.reshape(-1, 3, 3)


if __name__ == "__main__":
    key = jax.random.PRNGKey(0)

    # Small batch (tests the padded-tail / single-grid-step path).
    B = 16
    uv = jax.random.normal(key, (B, 3), dtype=jnp.float32)
    fn = jax.jit(lie_se2_pallas)
    T = jax.block_until_ready(fn(uv))
    T_ref = lie_se2_reference(uv)
    assert T.shape == (B, 3, 3), T.shape
    max_err = float(jnp.max(jnp.abs(T - T_ref)))
    assert max_err < 1e-5, f"max abs error {max_err}"

    # Non-multiple-of-block batch with a multi-step grid (locks in tail padding).
    B2 = 2500
    uv2 = jax.random.normal(jax.random.PRNGKey(1), (B2, 3), dtype=jnp.float32)
    fn2 = jax.jit(functools.partial(lie_se2_pallas, block_b=1024))
    T2 = jax.block_until_ready(fn2(uv2))
    T2_ref = lie_se2_reference(uv2)
    assert T2.shape == (B2, 3, 3), T2.shape
    max_err2 = float(jnp.max(jnp.abs(T2 - T2_ref)))
    assert max_err2 < 1e-5, f"max abs error {max_err2}"

    print("KERNEL_OK")
</pallas_src>

<mosaic_0001>
module attributes {stable_mosaic.version = 11 : i64} {
  func.func @_lie_se2_kernel(%arg0: i32, %arg1: memref<3x8x128xf32, #tpu.memory_space<vmem>>, %arg2: memref<9x8x128xf32, #tpu.memory_space<vmem>>) attributes {dimension_semantics = [#tpu.dimension_semantics<parallel>], iteration_bounds = array<i64: 1>, scalar_prefetch = 0 : i64, scratch_operands = 0 : i64, tpu.core_type = #tpu.core_type<tc>, window_params = [{transform_indices = @transform_0, window_bounds = array<i64: 3, 8, 128>}, {transform_indices = @transform_1, window_bounds = array<i64: 9, 8, 128>}]} {
    %c0 = arith.constant 0 : index
    %c0_0 = arith.constant 0 : index
    %c0_1 = arith.constant 0 : index
    %0 = vector.load %arg1[%c0, %c0_0, %c0_1] : memref<3x8x128xf32, #tpu.memory_space<vmem>>, vector<1x8x128xf32>
    %1 = vector.shape_cast %0 : vector<1x8x128xf32> to vector<8x128xf32>
    %c1 = arith.constant 1 : index
    %c0_2 = arith.constant 0 : index
    %c0_3 = arith.constant 0 : index
    %2 = vector.load %arg1[%c1, %c0_2, %c0_3] : memref<3x8x128xf32, #tpu.memory_space<vmem>>, vector<1x8x128xf32>
    %3 = vector.shape_cast %2 : vector<1x8x128xf32> to vector<8x128xf32>
    %c2 = arith.constant 2 : index
    %c0_4 = arith.constant 0 : index
    %c0_5 = arith.constant 0 : index
    %4 = vector.load %arg1[%c2, %c0_4, %c0_5] : memref<3x8x128xf32, #tpu.memory_space<vmem>>, vector<1x8x128xf32>
    %5 = vector.shape_cast %4 : vector<1x8x128xf32> to vector<8x128xf32>
    %6 = arith.mulf %5, %5 : vector<8x128xf32>
    %7 = math.absf %5 : vector<8x128xf32>
    %8 = math.sin %7 : vector<8x128xf32>
    %9 = math.cos %7 : vector<8x128xf32>
    %cst = arith.constant 9.99999974E-6 : f32
    %10 = vector.broadcast %cst : f32 to vector<8x128xf32>
    %11 = arith.addf %7, %10 : vector<8x128xf32>
    %cst_6 = arith.constant 1.000000e+00 : f32
    %12 = vector.broadcast %cst_6 : f32 to vector<8x128xf32>
    %13 = arith.divf %12, %11 : vector<8x128xf32>
    %cst_7 = arith.constant 9.99999974E-6 : f32
    %14 = vector.broadcast %cst_7 : f32 to vector<8x128xf32>
    %15 = arith.addf %6, %14 : vector<8x128xf32>
    %cst_8 = arith.constant 1.000000e+00 : f32
    %16 = vector.broadcast %cst_8 : f32 to vector<8x128xf32>
    %17 = arith.divf %16, %15 : vector<8x128xf32>
    %18 = arith.mulf %8, %13 : vector<8x128xf32>
    %cst_9 = arith.constant 1.000000e+00 : f32
    %19 = vector.broadcast %cst_9 : f32 to vector<8x128xf32>
    %20 = arith.subf %19, %9 : vector<8x128xf32>
    %21 = arith.mulf %20, %17 : vector<8x128xf32>
    %cst_10 = arith.constant 1.000000e+00 : f32
    %22 = vector.broadcast %cst_10 : f32 to vector<8x128xf32>
    %23 = arith.subf %22, %18 : vector<8x128xf32>
    %24 = arith.mulf %23, %17 : vector<8x128xf32>
    %25 = arith.mulf %21, %6 : vector<8x128xf32>
    %cst_11 = arith.constant 1.000000e+00 : f32
    %26 = vector.broadcast %cst_11 : f32 to vector<8x128xf32>
    %27 = arith.subf %26, %25 : vector<8x128xf32>
    %28 = arith.mulf %24, %6 : vector<8x128xf32>
    %cst_12 = arith.constant 1.000000e+00 : f32
    %29 = vector.broadcast %cst_12 : f32 to vector<8x128xf32>
    %30 = arith.subf %29, %28 : vector<8x128xf32>
    %31 = arith.mulf %30, %1 : vector<8x128xf32>
    %cst_13 = arith.constant 0.000000e+00 : f32
    %32 = vector.broadcast %cst_13 : f32 to vector<8x128xf32>
    %33 = arith.subf %32, %21 : vector<8x128xf32>
    %34 = arith.mulf %33, %5 : vector<8x128xf32>
    %35 = arith.mulf %34, %3 : vector<8x128xf32>
    %36 = arith.addf %31, %35 : vector<8x128xf32>
    %37 = arith.mulf %21, %5 : vector<8x128xf32>
    %38 = arith.mulf %37, %1 : vector<8x128xf32>
    %39 = arith.mulf %30, %3 : vector<8x128xf32>
    %40 = arith.addf %38, %39 : vector<8x128xf32>
    %c0_14 = arith.constant 0 : index
    %c0_15 = arith.constant 0 : index
    %c0_16 = arith.constant 0 : index
    %41 = vector.load %arg2[%c0_14, %c0_15, %c0_16] : memref<9x8x128xf32, #tpu.memory_space<vmem>>, vector<1x8x128xf32>
    %42 = vector.shape_cast %41 : vector<1x8x128xf32> to vector<8x128xf32>
    %43 = vector.shape_cast %27 : vector<8x128xf32> to vector<1x8x128xf32>
    tpu.vector_store %arg2[%c0_14, %c0_15, %c0_16], %43 {strides = array<i32>} : memref<9x8x128xf32, #tpu.memory_space<vmem>>, vector<1x8x128xf32>,
    %cst_17 = arith.constant 0.000000e+00 : f32
    %44 = vector.broadcast %cst_17 : f32 to vector<8x128xf32>
    %45 = arith.subf %44, %18 : vector<8x128xf32>
    %46 = arith.mulf %45, %5 : vector<8x128xf32>
    %c1_18 = arith.constant 1 : index
    %c0_19 = arith.constant 0 : index
    %c0_20 = arith.constant 0 : index
    %47 = vector.load %arg2[%c1_18, %c0_19, %c0_20] : memref<9x8x128xf32, #tpu.memory_space<vmem>>, vector<1x8x128xf32>
    %48 = vector.shape_cast %47 : vector<1x8x128xf32> to vector<8x128xf32>
    %49 = vector.shape_cast %46 : vector<8x128xf32> to vector<1x8x128xf32>
    tpu.vector_store %arg2[%c1_18, %c0_19, %c0_20], %49 {strides = array<i32>} : memref<9x8x128xf32, #tpu.memory_space<vmem>>, vector<1x8x128xf32>,
    %c2_21 = arith.constant 2 : index
    %c0_22 = arith.constant 0 : index
    %c0_23 = arith.constant 0 : index
    %50 = vector.load %arg2[%c2_21, %c0_22, %c0_23] : memref<9x8x128xf32, #tpu.memory_space<vmem>>, vector<1x8x128xf32>
    %51 = vector.shape_cast %50 : vector<1x8x128xf32> to vector<8x128xf32>
    %52 = vector.shape_cast %36 : vector<8x128xf32> to vector<1x8x128xf32>
    tpu.vector_store %arg2[%c2_21, %c0_22, %c0_23], %52 {strides = array<i32>} : memref<9x8x128xf32, #tpu.memory_space<vmem>>, vector<1x8x128xf32>,
    %53 = arith.mulf %18, %5 : vector<8x128xf32>
    %c3 = arith.constant 3 : index
    %c0_24 = arith.constant 0 : index
    %c0_25 = arith.constant 0 : index
    %54 = vector.load %arg2[%c3, %c0_24, %c0_25] : memref<9x8x128xf32, #tpu.memory_space<vmem>>, vector<1x8x128xf32>
    %55 = vector.shape_cast %54 : vector<1x8x128xf32> to vector<8x128xf32>
    %56 = vector.shape_cast %53 : vector<8x128xf32> to vector<1x8x128xf32>
    tpu.vector_store %arg2[%c3, %c0_24, %c0_25], %56 {strides = array<i32>} : memref<9x8x128xf32, #tpu.memory_space<vmem>>, vector<1x8x128xf32>,
    %c4 = arith.constant 4 : index
    %c0_26 = arith.constant 0 : index
    %c0_27 = arith.constant 0 : index
    %57 = vector.load %arg2[%c4, %c0_26, %c0_27] : memref<9x8x128xf32, #tpu.memory_space<vmem>>, vector<1x8x128xf32>
    %58 = vector.shape_cast %57 : vector<1x8x128xf32> to vector<8x128xf32>
    %59 = vector.shape_cast %27 : vector<8x128xf32> to vector<1x8x128xf32>
    tpu.vector_store %arg2[%c4, %c0_26, %c0_27], %59 {strides = array<i32>} : memref<9x8x128xf32, #tpu.memory_space<vmem>>, vector<1x8x128xf32>,
    %c5 = arith.constant 5 : index
    %c0_28 = arith.constant 0 : index
    %c0_29 = arith.constant 0 : index
    %60 = vector.load %arg2[%c5, %c0_28, %c0_29] : memref<9x8x128xf32, #tpu.memory_space<vmem>>, vector<1x8x128xf32>
    %61 = vector.shape_cast %60 : vector<1x8x128xf32> to vector<8x128xf32>
    %62 = vector.shape_cast %40 : vector<8x128xf32> to vector<1x8x128xf32>
    tpu.vector_store %arg2[%c5, %c0_28, %c0_29], %62 {strides = array<i32>} : memref<9x8x128xf32, #tpu.memory_space<vmem>>, vector<1x8x128xf32>,
    %cst_30 = arith.constant 0.000000e+00 : f32
    %63 = vector.broadcast %cst_30 : f32 to vector<8x128xf32>
    %c6 = arith.constant 6 : index
    %c0_31 = arith.constant 0 : index
    %c0_32 = arith.constant 0 : index
    %64 = vector.load %arg2[%c6, %c0_31, %c0_32] : memref<9x8x128xf32, #tpu.memory_space<vmem>>, vector<1x8x128xf32>
    %65 = vector.shape_cast %64 : vector<1x8x128xf32> to vector<8x128xf32>
    %66 = vector.shape_cast %63 : vector<8x128xf32> to vector<1x8x128xf32>
    tpu.vector_store %arg2[%c6, %c0_31, %c0_32], %66 {strides = array<i32>} : memref<9x8x128xf32, #tpu.memory_space<vmem>>, vector<1x8x128xf32>,
    %cst_33 = arith.constant 0.000000e+00 : f32
    %67 = vector.broadcast %cst_33 : f32 to vector<8x128xf32>
    %c7 = arith.constant 7 : index
    %c0_34 = arith.constant 0 : index
    %c0_35 = arith.constant 0 : index
    %68 = vector.load %arg2[%c7, %c0_34, %c0_35] : memref<9x8x128xf32, #tpu.memory_space<vmem>>, vector<1x8x128xf32>
    %69 = vector.shape_cast %68 : vector<1x8x128xf32> to vector<8x128xf32>
    %70 = vector.shape_cast %67 : vector<8x128xf32> to vector<1x8x128xf32>
    tpu.vector_store %arg2[%c7, %c0_34, %c0_35], %70 {strides = array<i32>} : memref<9x8x128xf32, #tpu.memory_space<vmem>>, vector<1x8x128xf32>,
    %cst_36 = arith.constant 1.000000e+00 : f32
    %71 = vector.broadcast %cst_36 : f32 to vector<8x128xf32>
    %c8 = arith.constant 8 : index
    %c0_37 = arith.constant 0 : index
    %c0_38 = arith.constant 0 : index
    %72 = vector.load %arg2[%c8, %c0_37, %c0_38] : memref<9x8x128xf32, #tpu.memory_space<vmem>>, vector<1x8x128xf32>
    %73 = vector.shape_cast %72 : vector<1x8x128xf32> to vector<8x128xf32>
    %74 = vector.shape_cast %71 : vector<8x128xf32> to vector<1x8x128xf32>
    tpu.vector_store %arg2[%c8, %c0_37, %c0_38], %74 {strides = array<i32>} : memref<9x8x128xf32, #tpu.memory_space<vmem>>, vector<1x8x128xf32>,
    return
  }
  func.func @transform_0(%arg0: i32) -> (i32, i32, i32) {
    %c0_i32 = arith.constant 0 : i32
    %c0_i32_0 = arith.constant 0 : i32
    %c0_i32_1 = arith.constant 0 : i32
    return %c0_i32, %arg0, %c0_i32_0 : i32, i32, i32
  }
  func.func @transform_1(%arg0: i32) -> (i32, i32, i32) {
    %c0_i32 = arith.constant 0 : i32
    %c0_i32_0 = arith.constant 0 : i32
    %c0_i32_1 = arith.constant 0 : i32
    return %c0_i32, %arg0, %c0_i32_0 : i32, i32, i32
  }
}

</mosaic_0001>

<bundles_post_ra>
// kernel: lie_se2_pallas.1
= control target key start
LH: loop header
LB: loop body
LE: loop exit
PB: predicated region body
PF: predicated region fallthrough
CT: control target
= control target key end

     0   :  { %v421_v12 = vmov 683565275   ;;  %v422_v14 = vmov 2475754826   ;;  %v423_v16 = vmov 2131351028   ;;  %s579_s0 = inlined_call_operand.vmem [shape: f32[3,8,128], index: 0, kind: input, shape index: {}]   ;;  %s580_s1 = inlined_call_operand.vmem [shape: f32[9,8,128], index: 1, kind: output, shape index: {}]  }
   0x1   :  { %v443_v0 = vld [vmem:[%s579_s0 + $0x10] sm:$0xff]  ;;  %v424_v18 = vmov 2102212464   ;;  %v425_v20 = vmov 920167782  }
   0x2   :  { %v446_v1 = vand.u32 2147483647, %v443_v0  ;;  %v426_v26 = vmov 1326507024  }
   0x4   :  { %v17_v2 = vand.u32 2139095040, %v446_v1  ;;  %v21_v6 = vand.u32 8388607, %v446_v1  ;;  %vm16_vm12 = vcmp.le.f32.partialorder %v446_v1, 0.7853982 }
   0x6   :  { %v18_v3 = vshrl.u32 %v17_v2, 23  ;;  %v22_v9 = vor.u32 8388608, %v21_v6  ;;  %v427_v2 = vmov 0  }
   0x8   :  { %v394_v4 = vadd.s32 4294967169, %v18_v3  ;;  %v453_v28 = vshll.u32 %v22_v9, 8 }
   0xa   :  { %v24_v5 = vadd.s32 1, %v394_v4  ;;  %v63_v40 = vand.u32 65535, %v453_v28  ;;  %v64_v41 = vshrl.u32 %v453_v28, 16 }
   0xc   :  { %vm25_vm0 = vcmp.gt.s32.totalorder %v24_v5, 0 }
   0xd   :  { %v26_v7 = vsel %vm25_vm0, %v24_v5, 0 }
   0xe   :  { %v28_v8 = vand.u32 31, %v26_v7  ;;  %v450_v10 = vshrl.u32 %v26_v7, 5 }
  0x10   :  { %v29_v11 = vsub.s32 32, %v28_v8  ;;  %v31_v13 = vshll.u32 %v421_v12, %v28_v8  ;;  %v34_v15 = vshll.u32 %v422_v14, %v28_v8  ;;  %v37_v17 = vshll.u32 %v423_v16, %v28_v8 }
  0x11   :  { %v40_v19 = vshll.u32 %v424_v18, %v28_v8  ;;  %v43_v21 = vshll.u32 %v425_v20, %v28_v8  ;;  %vm46_vm1 = vcmp.lt.s32.totalorder %v450_v10, 1  ;;  %vm49_vm2 = vcmp.lt.s32.totalorder %v450_v10, 4 }
  0x12   :  { %v32_v22 = vshrl.u32 %v422_v14, %v29_v11  ;;  %v35_v23 = vshrl.u32 %v423_v16, %v29_v11  ;;  %v38_v24 = vshrl.u32 %v424_v18, %v29_v11  ;;  %v41_v25 = vshrl.u32 %v425_v20, %v29_v11 }
  0x13   :  { %v44_v27 = vshrl.u32 %v426_v26, %v29_v11  ;;  %vm48_vm3 = vcmp.lt.s32.totalorder %v450_v10, 3  ;;  %vm47_vm4 = vcmp.lt.s32.totalorder %v450_v10, 2  ;;  %v30_v48 = vshrl.u32 %v421_v12, %v29_v11 }
  0x14   :  { %v33_v29 = vor.u32 %v32_v22, %v31_v13  ;;  %v36_v30 = vor.u32 %v35_v23, %v34_v15  ;;  %v39_v31 = vor.u32 %v38_v24, %v37_v17  ;;  %v42_v32 = vor.u32 %v41_v25, %v40_v19 }
  0x15   :  { %v45_v33 = vor.u32 %v44_v27, %v43_v21  ;;  %v487_v10 = vmul.f32 %v443_v0, %v443_v0 }
  0x16   :  { %v54_v34 = vsel %vm46_vm1, %v33_v29, %v36_v30  ;;  %v58_v35 = vsel %vm46_vm1, %v36_v30, %v39_v31  ;;  %v55_v36 = vsel %vm49_vm2, %v42_v32, 920167782  ;;  %v50_v61 = vsel %vm46_vm1, %v30_v48, %v33_v29 }
  0x17   :  { %v59_v37 = vsel %vm49_vm2, %v45_v33, 1326507024  ;;  %v56_v38 = vsel %vm48_vm3, %v39_v31, %v55_v36  ;;  %v51_v63 = vsel %vm49_vm2, %v39_v31, 2102212464 }
  0x18   :  { %v60_v39 = vsel %vm48_vm3, %v42_v32, %v59_v37  ;;  %v57_v42 = vsel %vm47_vm4, %v54_v34, %v56_v38  ;;  %v52_v12 = vsel %vm48_vm3, %v36_v30, %v51_v63  ;;  %v490_v38 = vadd.f32 1e-05, %v446_v1 }
  0x19   :  { %v61_v43 = vsel %vm47_vm4, %v58_v35, %v60_v39  ;;  %v87_v46 = vand.u32 65535, %v57_v42  ;;  %v88_v47 = vshrl.u32 %v57_v42, 16  ;;  %v53_v20 = vsel %vm47_vm4, %v50_v61, %v52_v12 }
  0x1a   :  { %v65_v44 = vand.u32 65535, %v61_v43  ;;  %v66_v45 = vshrl.u32 %v61_v43, 16  ;;  %v107_v24 = vmul.u32 %v453_v28, %v53_v20  ;;  %v493_v42 = vadd.f32 1e-05, %v487_v10 }
  0x1b   :  { %v89_v52 = vmul.u32 %v87_v46, %v63_v40  ;;  %v90_v53 = vmul.u32 %v88_v47, %v63_v40  ;;  %v91_v54 = vmul.u32 %v87_v46, %v64_v41  ;;  %v92_v58 = vmul.u32 %v88_v47, %v64_v41 }
  0x1c   :  { %v67_v49 = vmul.u32 %v65_v44, %v63_v40  ;;  %v68_v50 = vmul.u32 %v66_v45, %v63_v40  ;;  %v69_v51 = vmul.u32 %v65_v44, %v64_v41  ;;  %v70_v55 = vmul.u32 %v66_v45, %v64_v41 }
  0x1d   :  { %v93_v59 = vshll.u32 %v90_v53, 16  ;;  %v95_v60 = vshll.u32 %v91_v54, 16  ;;  %v94_v9 = vshrl.u32 %v90_v53, 16  ;;  %v96_v16 = vshrl.u32 %v91_v54, 16 }
  0x1e   :  { %v71_v56 = vshll.u32 %v68_v50, 16  ;;  %v73_v57 = vshll.u32 %v69_v51, 16  ;;  %v72_v5 = vshrl.u32 %v68_v50, 16  ;;  %v74_v13 = vshrl.u32 %v69_v51, 16 }
  0x1f   :  { %vm97_vm6 = vc.u32 %v89_v52, %v93_v59  ;;  %v99_v4 = vadd.s32 %v93_v59, %v89_v52  ;;  %417 = vrcp.f32 %v490_v38  ;;  %vm324_vm13 = vweird.f32 %v490_v38 }
  0x20   :  { %vm75_vm5 = vc.u32 %v67_v49, %v71_v56  ;;  %v77_v62 = vadd.s32 %v71_v56, %v67_v49  ;;  %v98_v7 = vsel %vm97_vm6, 1, %v427_v2  ;;  %419 = vrcp.f32 %v493_v42 }
  0x21   :  { %v76_v3 = vsel %vm75_vm5, 1, %v427_v2  ;;  %v100_v11 = vadd.s32 %v98_v7, %v92_v58  ;;  %vm101_vm8 = vc.u32 %v99_v4, %v95_v60  ;;  %v103_v19 = vadd.s32 %v99_v4, %v95_v60 }
  0x22   :  { %v78_v6 = vadd.s32 %v76_v3, %v70_v55  ;;  %vm79_vm7 = vc.u32 %v77_v62, %v73_v57  ;;  %v102_v15 = vsel %vm101_vm8, 1, %v427_v2  ;;  %vm340_vm15 = vweird.f32 %v493_v42 }
  0x23   :  { %v80_v8 = vsel %vm79_vm7, 1, %v427_v2  ;;  %v104_v17 = vadd.s32 %v102_v15, %v100_v11  ;;  %v428_v2 = vmov 0.0  }
  0x24   :  { %v82_v14 = vadd.s32 %v80_v8, %v78_v6  ;;  %405 = vst [vmem:[%s580_s1 + $0x30] sm:$0xff] %v428_v2  ;;  %v429_v6 = vmov 1.0  }
  0x25   :  { %v105_v21 = vadd.s32 %v104_v17, %v94_v9  ;;  %v497_v50 = vpop.eup %417  ;;  %406 = vst [vmem:[%s580_s1 + $0x38] sm:$0xff] %v428_v2 }
  0x26   :  { %v83_v18 = vadd.s32 %v82_v14, %v72_v5  ;;  %v500_v52 = vpop.eup %419  ;;  %v320_v54 = vmul.f32 %v497_v50, %v490_v38  ;;  %407 = vst [vmem:[%s580_s1 + $0x40] sm:$0xff] %v429_v6  ;;  %vm325_vm14 = vweird.f32 %v497_v50 }
  0x27   :  { %v106_v23 = vadd.s32 %v105_v21, %v96_v16  ;;  %v336_v57 = vmul.f32 %v500_v52, %v493_v42  ;;  %v330_v16 = vand.u32 2147483648, %v490_v38  ;;  %vm341_vm0 = vweird.f32 %v500_v52  ;;  %vm526_vm2 = vmor %vm324_vm13, %vm325_vm14 }
  0x28   :  { %v84_v22 = vadd.s32 %v83_v18, %v74_v13  ;;  %v321_v60 = vsub.f32 1.0, %v320_v54  ;;  %v328_v18 = vand.u32 2147483647, %v490_v38  ;;  %v346_v21 = vand.u32 2147483648, %v493_v42  ;;  %vm536_vm6 = vmor %vm340_vm15, %vm341_vm0 }
  0x29   :  { %v110_v25 = vadd.s32 1, %v106_v23  ;;  %v337_v3 = vsub.f32 1.0, %v336_v57 }
  0x2a   :  { %vm109_vm9 = vc.u32 %v84_v22, %v103_v19  ;;  %v108_v37 = vadd.s32 %v103_v19, %v84_v22  ;;  %v322_v7 = vmul.f32 %v497_v50, %v321_v60 }
  0x2b   :  { %v111_v26 = vsel %vm109_vm9, %v110_v25, %v106_v23  ;;  %v338_v13 = vmul.f32 %v500_v52, %v337_v3  ;;  %vm329_vm9 = vcmp.eq.f32.partialorder %v328_v18, 8.507059e+37 }
  0x2c   :  { %v112_v27 = vadd.s32 %v111_v26, %v107_v24  ;;  %v323_v17 = vadd.f32 %v497_v50, %v322_v7  ;;  %v344_v24 = vand.u32 2147483647, %v493_v42 }
  0x2d   :  { %v339_v23 = vadd.f32 %v500_v52, %v338_v13 }
  0x2e   :  { %v113_v29 = vadd.s32 536870912, %v112_v27 }
  0x30   :  { %v114_v30 = vshrl.u32 %v113_v29, 30  ;;  %v331_v29 = vor.u32 1.1754944e-38, %v330_v16 }
  0x32   :  { %v115_v31 = vshll.u32 %v114_v30, 30  ;;  %v139_v56 = vsel %vm16_vm12, 0, %v114_v30  ;;  %v327_v30 = vsel %vm526_vm2, %v497_v50, %v323_v17 }
  0x33   :  { %v156_v63 = vadd.s32 3, %v139_v56  ;;  %v308_v12 = vand.u32 3, %v139_v56 }
  0x34   :  { %v116_v32 = vsub.s32 %v112_v27, %v115_v31 }
  0x35   :  { %v157_v11 = vand.u32 3, %v156_v63  ;;  %vm313_vm3 = vcmp.eq.s32.totalorder %v308_v12, 2  ;;  %vm309_vm5 = vcmp.lt.s32.totalorder %v308_v12, 2  ;;  %vm310_vm7 = vcmp.eq.s32.totalorder %v308_v12, 0 }
  0x36   :  { %vm117_vm10 = vcmp.lt.s32.totalorder %v116_v32, 0  ;;  %v118_v33 = vsub.s32 0, %v116_v32 }
  0x37   :  { %vm159_vm1 = vcmp.eq.s32.totalorder %v157_v11, 0  ;;  %vm162_vm4 = vcmp.eq.s32.totalorder %v157_v11, 2  ;;  %vm158_vm8 = vcmp.lt.s32.totalorder %v157_v11, 2 }
  0x38   :  { %v119_v34 = vsel %vm117_vm10, %v118_v33, %v116_v32  ;;  %v347_v33 = vor.u32 1.1754944e-38, %v346_v21  ;;  %vm155_vm10 = vweird.f32 %v446_v1 }
  0x39   :  { %v120_v35 = vclz %v119_v34 }
  0x3b   :  { %v395_v36 = vadd.s32 4294967294, %v120_v35  ;;  %v343_v35 = vsel %vm536_vm6, %v500_v52, %v339_v23  ;;  %v8_v52 = vld [vmem:[%s579_s0] sm:$0xff] }
  0x3d   :  { %vm396_vm11 = vcmp.lt.s32.totalorder %v395_v36, 0 }
  0x3e   :  { %v123_v28 = vsel %vm396_vm11, 0, %v395_v36  ;;  %vm345_vm11 = vcmp.eq.f32.partialorder %v344_v24, 8.507059e+37 }
  0x3f   :  { %v124_v39 = vsub.s32 32, %v123_v28  ;;  %v125_v40 = vshll.u32 %v116_v32, %v123_v28  ;;  %v128_v41 = vsub.s32 4294967266, %v123_v28  ;;  %v332_v28 = vsel %vm329_vm9, %v331_v29, %v327_v30 }
  0x41   :  { %v126_v43 = vshrl.u32 %v108_v37, %v124_v39  ;;  %v129_v44 = vadd.s32 127, %v128_v41  ;;  %v348_v41 = vsel %vm345_vm11, %v347_v33, %v343_v35 }
  0x43   :  { %v127_v45 = vor.u32 %v126_v43, %v125_v40  ;;  %v130_v46 = vshll.u32 %v129_v44, 23 }
  0x45   :  { %v131_v47 = vor.u32 4788187, %v130_v46  ;;  %v134_v48 = vcvt.s32.f32 %v127_v45 }
  0x47   :  { %v132_v49 = vand.u32 2147483647, %v131_v47 }
  0x49   :  { %v135_v51 = vmul.f32 %v134_v48, %v132_v49 }
  0x4b   :  { %v138_v53 = vsel %vm16_vm12, %v446_v1, %v135_v51 }
  0x4c   :  { %v140_v55 = vmul.f32 %v138_v53, %v138_v53 }
  0x4e   :  { %v141_v58 = vmul.f32 -0.001358992, %v140_v55  ;;  %v148_v59 = vmul.f32 -0.00019511016, %v140_v55 }
  0x50   :  { %v142_v61 = vadd.f32 0.041655596, %v141_v58  ;;  %v149_v62 = vadd.f32 0.008332121, %v148_v59 }
  0x52   :  { %v143_v4 = vmul.f32 %v142_v61, %v140_v55  ;;  %v150_v5 = vmul.f32 %v149_v62, %v140_v55 }
  0x54   :  { %v144_v8 = vadd.f32 -0.4999988, %v143_v4  ;;  %v151_v9 = vadd.f32 -0.16666654, %v150_v5 }
  0x56   :  { %v145_v14 = vmul.f32 %v144_v8, %v140_v55  ;;  %v152_v15 = vmul.f32 %v151_v9, %v140_v55 }
  0x58   :  { %v146_v19 = vadd.f32 1.0, %v145_v14  ;;  %v153_v20 = vadd.f32 1.0, %v152_v15 }
  0x5a   :  { %v154_v25 = vmul.f32 %v153_v20, %v138_v53  ;;  %v163_v26 = vxor.u32 2147483648, %v146_v19  ;;  %v392_v53 = vld [vmem:[%s579_s0 + $0x8] sm:$0xff] }
  0x5c   :  { %v160_v31 = vxor.u32 2147483648, %v154_v25  ;;  %v315_v32 = vsel %vm313_vm3, %v163_v26, %v154_v25  ;;  %v164_v34 = vsel %vm162_vm4, %v163_v26, %v154_v25 }
  0x5e   :  { %v312_v36 = vsel %vm310_vm7, %v146_v19, %v160_v31  ;;  %v161_v37 = vsel %vm159_vm1, %v146_v19, %v160_v31 }
  0x5f   :  { %v316_v38 = vsel %vm309_vm5, %v312_v36, %v315_v32  ;;  %v165_v39 = vsel %vm158_vm8, %v161_v37, %v164_v34 }
  0x60   :  { %v317_v40 = vsel %vm155_vm10, nan, %v316_v38  ;;  %v166_v42 = vsel %vm155_vm10, nan, %v165_v39 }
  0x61   :  { %v351_v43 = vsub.f32 1.0, %v317_v40  ;;  %v350_v44 = vmul.f32 %v332_v28, %v166_v42 }
  0x63   :  { %v352_v45 = vmul.f32 %v351_v43, %v348_v41  ;;  %v369_v46 = vsub.f32 0.0, %v350_v44  ;;  %v353_v1 = vsub.f32 1.0, %v350_v44  ;;  %v375_v47 = vmul.f32 %v443_v0, %v350_v44 }
  0x65   :  { %v355_v48 = vmul.f32 %v352_v45, %v487_v10  ;;  %v370_v49 = vmul.f32 %v443_v0, %v369_v46  ;;  %v354_v50 = vmul.f32 %v353_v1, %v348_v41  ;;  %v360_v51 = vsub.f32 0.0, %v352_v45  ;;  %402 = vst [vmem:[%s580_s1 + $0x18] sm:$0xff] %v375_v47 }
  0x66   :  { %v364_v54 = vmul.f32 %v443_v0, %v352_v45 }
  0x67   :  { %v356_v55 = vsub.f32 1.0, %v355_v48  ;;  %400 = vst [vmem:[%s580_s1 + $0x8] sm:$0xff] %v370_v49  ;;  %v357_v56 = vmul.f32 %v354_v50, %v487_v10  ;;  %v361_v57 = vmul.f32 %v443_v0, %v360_v51 }
  0x68   :  { %v365_v60 = vmul.f32 %v364_v54, %v8_v52 }
  0x69   :  { %368 = vst [vmem:[%s580_s1] sm:$0xff] %v356_v55  ;;  %v358_v58 = vsub.f32 1.0, %v357_v56  ;;  %v362_v59 = vmul.f32 %v392_v53, %v361_v57 }
  0x6a   :  { %403 = vst [vmem:[%s580_s1 + $0x20] sm:$0xff] %v356_v55 }
  0x6b   :  { %v359_v61 = vmul.f32 %v358_v58, %v8_v52  ;;  %v366_v62 = vmul.f32 %v392_v53, %v358_v58 }
  0x6d   :  { %v363_v63 = vadd.f32 %v362_v59, %v359_v61  ;;  %v367_v2 = vadd.f32 %v366_v62, %v365_v60 }
  0x6f   :  { %401 = vst [vmem:[%s580_s1 + $0x10] sm:$0xff] %v363_v63 }
  0x70   :  { %404 = vst [vmem:[%s580_s1 + $0x28] sm:$0xff] %v367_v2 }

</bundles_post_ra>
